<compile_context>
chip_gen: v7x
topology: tpu7x:2x2x1
jax: 0.10.0
libtpu: 0.0.40
codegen_flags: <defaults>
</compile_context>

<pallas_src>
import functools

import jax
import jax.numpy as jnp
from jax.experimental import pallas as pl
from jax.experimental.pallas import tpu as pltpu

EPS = 1e-5
MOMENTUM = 0.9
_MiB = 1024 * 1024


# ------------------------------------------------- device-aware VMEM budgets --
def _vmem_params():
    """Return (vmem_limit_bytes, per-tile byte target) for this TPU generation."""
    phys = 64 * _MiB
    try:
        info = pltpu.get_tpu_info()
        phys = int(getattr(info, "vmem_capacity_bytes", phys))
    except Exception:  # pragma: no cover - conservative fallback
        pass
    if phys >= 100 * _MiB:            # v5e / v6e: 128 MiB physical VMEM
        return 96 * _MiB, 8 * _MiB
    # v7x: 64 MiB physical VMEM (or unknown -> conservative)
    return min(48 * _MiB, (phys * 3) // 4), 4 * _MiB


# ---------------------------------------------------------------------- tiling --
def _tile_candidates(extent, align):
    """Divisors of `extent` that are multiples of `align`, plus the full extent."""
    cands = [d for d in range(align, extent + 1, align) if extent % d == 0]
    if extent not in cands:
        cands.append(extent)            # full-extent block is always legal
    return cands


def _choose_tiles_2d(rows, hw, target_bytes, itemsize=4):
    """Pick (rows_tile, hw_tile) for a (rows, hw) f32 view, <= target_bytes."""
    row_cands = _tile_candidates(rows, 8)
    hw_cands = _tile_candidates(hw, 128)
    fitting, all_combos = [], []
    for ht in hw_cands:
        for rt in row_cands:
            b = rt * ht * itemsize
            all_combos.append((b, ht, rt))
            if b <= target_bytes:
                fitting.append((b, ht, rt))
    if fitting:
        _, ht, rt = max(fitting)        # biggest fitting tile, prefer lane-dense
    else:
        # Only possible for huge non-128-aligned HW; take the smallest legal
        # footprint (vmem_limit keeps enough headroom for double-buffering).
        _, ht, rt = min(all_combos)
    return rt, ht


# --------------------------------------------------------------------- kernels --
def _bn_fused_vmem_kernel(x_ref, gamma_ref, beta_ref, y_ref, mean_ref, var_ref,
                          *, inv_m):
    """Whole-x-in-VMEM path: 1 HBM read + 1 HBM write of x, centered variance."""
    x = x_ref[...]                                                # (N, C, HW)
    s = jnp.sum(jnp.sum(x, axis=2, keepdims=True), axis=0, keepdims=True)
    mean = s * inv_m                                              # (1, C, 1)
    cen = x - mean
    var = jnp.sum(jnp.sum(cen * cen, axis=2, keepdims=True),
                  axis=0, keepdims=True) * inv_m                  # (1, C, 1)
    inv_std = jax.lax.rsqrt(var + EPS)
    xhat_scale = gamma_ref[...] * inv_std                         # (1, C, 1)
    y_ref[...] = cen * xhat_scale + beta_ref[...]
    mean_ref[...] = mean
    var_ref[...] = var


def _bn_stats_kernel(x_ref, sum_ref, sq_ref):
    """Per-row partial sums / sums-of-squares; accumulates across the HW axis."""
    @pl.when(pl.program_id(1) == 0)
    def _init():
        sum_ref[...] = jnp.zeros_like(sum_ref)
        sq_ref[...] = jnp.zeros_like(sq_ref)

    x = x_ref[...]                                                # (rt, ht)
    sum_ref[...] += jnp.sum(x, axis=1, keepdims=True)             # (rt, 1)
    sq_ref[...] += jnp.sum(x * x, axis=1, keepdims=True)          # (rt, 1)


def _bn_norm_kernel(x_ref, scale_ref, shift_ref, y_ref):
    """y = x * scale + shift, per-row scale/shift (lane broadcast)."""
    y_ref[...] = x_ref[...] * scale_ref[...] + shift_ref[...]


# --------------------------------------------------------------- pallas wrappers --
def _row_stats_2d(x2d, rows_tile, hw_tile, vmem_limit):
    rows, hw = x2d.shape
    grid = (rows // rows_tile, hw // hw_tile)
    x_spec = pl.BlockSpec((rows_tile, hw_tile), lambda i, j: (i, j))
    vec_spec = pl.BlockSpec((rows_tile, 1), lambda i, j: (i, 0))
    return pl.pallas_call(
        _bn_stats_kernel,
        grid=grid,
        in_specs=[x_spec],
        out_specs=[vec_spec, vec_spec],
        out_shape=[jax.ShapeDtypeStruct((rows, 1), jnp.float32)] * 2,
        compiler_params=pltpu.CompilerParams(
            # Leading (row-block) axis is parallel -> on v7x both TensorCores
            # stream their own HBM share; HW-block axis carries the accumulator.
            dimension_semantics=("parallel", "arbitrary"),
            vmem_limit_bytes=vmem_limit),
    )(x2d)


def _normalize_2d(x2d, scale_rows, shift_rows, rows_tile, hw_tile, vmem_limit):
    rows, hw = x2d.shape
    grid = (rows // rows_tile, hw // hw_tile)
    x_spec = pl.BlockSpec((rows_tile, hw_tile), lambda i, j: (i, j))
    vec_spec = pl.BlockSpec((rows_tile, 1), lambda i, j: (i, 0))
    return pl.pallas_call(
        _bn_norm_kernel,
        grid=grid,
        in_specs=[x_spec, vec_spec, vec_spec],
        out_specs=x_spec,
        out_shape=jax.ShapeDtypeStruct((rows, hw), jnp.float32),
        compiler_params=pltpu.CompilerParams(
            dimension_semantics=("parallel", "parallel"),
            vmem_limit_bytes=vmem_limit),
    )(x2d, scale_rows, shift_rows)


# ----------------------------------------------------------------------- public --
def batch_norm_pallas(x_nchw, gamma, beta, moving_mean, moving_var, *,
                      training=True, force_two_pass=False):
    """Training/eval BatchNorm forward for NCHW f32 input.

    x_nchw: (N, C, H, W); gamma/beta/moving_*: (1, C, 1, 1).
    Returns (Y, new_moving_mean, new_moving_var).
    """
    n, c, h, w = x_nchw.shape
    hw = h * w
    rows = n * c
    m = n * hw

    gamma_c = gamma.reshape(c)
    beta_c = beta.reshape(c)
    mm_c = moving_mean.reshape(c)
    mv_c = moving_var.reshape(c)

    vmem_limit, tile_target = _vmem_params()

    if not training:
        # Eval mode: normalize with moving statistics (single read + write of x).
        inv_std = jax.lax.rsqrt(mv_c + EPS)
        scale_c = gamma_c * inv_std
        shift_c = beta_c - mm_c * scale_c
        rows_tile, hw_tile = _choose_tiles_2d(rows, hw, tile_target)
        scale_rows = jnp.broadcast_to(scale_c[None, :], (n, c)).reshape(rows, 1)
        shift_rows = jnp.broadcast_to(shift_c[None, :], (n, c)).reshape(rows, 1)
        y2d = _normalize_2d(x_nchw.reshape(rows, hw), scale_rows, shift_rows,
                            rows_tile, hw_tile, vmem_limit)
        return y2d.reshape(n, c, h, w), moving_mean, moving_var

    # ------------------------------ training mode ------------------------------
    x_bytes = rows * hw * 4
    fits_vmem = (4 * x_bytes) <= vmem_limit   # x-in + y-out + temporaries, single-buffered

    if fits_vmem and not force_two_pass:
        # Fused single-read path (typical later-layer CNN activations).
        x3d = x_nchw.reshape(n, c, hw)                  # free metadata reshape
        y3d, mean31, var31 = pl.pallas_call(
            functools.partial(_bn_fused_vmem_kernel, inv_m=1.0 / m),
            out_shape=(jax.ShapeDtypeStruct((n, c, hw), jnp.float32),
                       jax.ShapeDtypeStruct((1, c, 1), jnp.float32),
                       jax.ShapeDtypeStruct((1, c, 1), jnp.float32)),
            compiler_params=pltpu.CompilerParams(vmem_limit_bytes=vmem_limit),
        )(x3d, gamma.reshape(1, c, 1), beta.reshape(1, c, 1))
        mean_c = mean31.reshape(c)
        var_c = var31.reshape(c)
        y_out = y3d.reshape(n, c, h, w)
    else:
        # Two-pass tiled path: 2 HBM reads + 1 HBM write of x total.
        # 2-D (N*C, HW) view keeps HW lane-dense and fills sublanes even for C < 8.
        x2d = x_nchw.reshape(rows, hw)                  # free metadata reshape
        rows_tile, hw_tile = _choose_tiles_2d(rows, hw, tile_target)
        row_sum, row_sq = _row_stats_2d(x2d, rows_tile, hw_tile, vmem_limit)

        # Tiny (C,)-sized finalize in plain JAX (per perf review).
        mean_c = row_sum.reshape(n, c).sum(axis=0) / m
        ex2_c = row_sq.reshape(n, c).sum(axis=0) / m
        var_c = jnp.maximum(ex2_c - mean_c * mean_c, 0.0)
        inv_std = jax.lax.rsqrt(var_c + EPS)
        scale_c = gamma_c * inv_std
        shift_c = beta_c - mean_c * scale_c

        scale_rows = jnp.broadcast_to(scale_c[None, :], (n, c)).reshape(rows, 1)
        shift_rows = jnp.broadcast_to(shift_c[None, :], (n, c)).reshape(rows, 1)
        y2d = _normalize_2d(x2d, scale_rows, shift_rows,
                            rows_tile, hw_tile, vmem_limit)
        y_out = y2d.reshape(n, c, h, w)

    new_mm = MOMENTUM * mm_c + (1.0 - MOMENTUM) * mean_c
    new_mv = MOMENTUM * mv_c + (1.0 - MOMENTUM) * var_c
    return (y_out,
            new_mm.reshape(1, c, 1, 1),
            new_mv.reshape(1, c, 1, 1))


# ------------------------------------------------------------------- reference --
def _batch_norm_ref(x, gamma, beta, moving_mean, moving_var):
    mean = x.mean(axis=(0, 2, 3), keepdims=True)
    var = ((x - mean) ** 2).mean(axis=(0, 2, 3), keepdims=True)
    x_hat = (x - mean) / jnp.sqrt(var + EPS)
    y = gamma * x_hat + beta
    new_mm = MOMENTUM * moving_mean + (1.0 - MOMENTUM) * mean
    new_mv = MOMENTUM * moving_var + (1.0 - MOMENTUM) * var
    return y, new_mm, new_mv


if __name__ == "__main__":
    num_features = 4
    n, c, h, w = 2, num_features, 16, 16

    key = jax.random.PRNGKey(0)
    x = jax.random.normal(key, (n, c, h, w), dtype=jnp.float32)

    # Deterministic parameter init, matching BatchNorm.__init__ (num_dims=4).
    gamma = jnp.ones((1, c, 1, 1), dtype=jnp.float32)
    beta = jnp.zeros((1, c, 1, 1), dtype=jnp.float32)
    moving_mean = jnp.zeros((1, c, 1, 1), dtype=jnp.float32)
    moving_var = jnp.ones((1, c, 1, 1), dtype=jnp.float32)

    y_ref, mm_ref, mv_ref = _batch_norm_ref(x, gamma, beta, moving_mean, moving_var)

    # Default dispatch: this shape takes the fused single-read VMEM path.
    y, new_mm, new_mv = batch_norm_pallas(x, gamma, beta, moving_mean, moving_var)
    jax.block_until_ready((y, new_mm, new_mv))
    assert jnp.allclose(y, y_ref, atol=1e-4, rtol=1e-4)
    assert jnp.allclose(new_mm, mm_ref, atol=1e-5, rtol=1e-5)
    assert jnp.allclose(new_mv, mv_ref, atol=1e-5, rtol=1e-5)

    # Also exercise the tiled two-pass path used for large activations.
    y2, mm2, mv2 = batch_norm_pallas(x, gamma, beta, moving_mean, moving_var,
                                     force_two_pass=True)
    jax.block_until_ready((y2, mm2, mv2))
    assert jnp.allclose(y2, y_ref, atol=1e-4, rtol=1e-4)
    assert jnp.allclose(mm2, mm_ref, atol=1e-5, rtol=1e-5)
    assert jnp.allclose(mv2, mv_ref, atol=1e-5, rtol=1e-5)

    print("KERNEL_OK")
</pallas_src>

<mosaic_0001>
module attributes {stable_mosaic.version = 11 : i64} {
  func.func @_bn_fused_vmem_kernel(%arg0: memref<2x4x256xf32, #tpu.memory_space<vmem>>, %arg1: memref<1x4x1xf32, #tpu.memory_space<vmem>>, %arg2: memref<1x4x1xf32, #tpu.memory_space<vmem>>, %arg3: memref<2x4x256xf32, #tpu.memory_space<vmem>>, %arg4: memref<1x4x1xf32, #tpu.memory_space<vmem>>, %arg5: memref<1x4x1xf32, #tpu.memory_space<vmem>>) attributes {dimension_semantics = [], scalar_prefetch = 0 : i64, scratch_operands = 0 : i64, tpu.core_type = #tpu.core_type<tc>} {
    %c0 = arith.constant 0 : index
    %c0_0 = arith.constant 0 : index
    %c0_1 = arith.constant 0 : index
    %0 = vector.load %arg0[%c0, %c0_0, %c0_1] : memref<2x4x256xf32, #tpu.memory_space<vmem>>, vector<2x4x256xf32>
    %cst = arith.constant dense<0.000000e+00> : vector<2x4xf32>
    %1 = vector.multi_reduction <add>, %0, %cst [2] : vector<2x4x256xf32> to vector<2x4xf32>
    %2 = vector.shape_cast %1 : vector<2x4xf32> to vector<2x4x1xf32>
    %cst_2 = arith.constant dense<0.000000e+00> : vector<4x1xf32>
    %3 = vector.multi_reduction <add>, %2, %cst_2 [0] : vector<2x4x1xf32> to vector<4x1xf32>
    %4 = vector.shape_cast %3 : vector<4x1xf32> to vector<1x4x1xf32>
    %cst_3 = arith.constant 0.001953125 : f32
    %5 = vector.broadcast %cst_3 : f32 to vector<1x4x1xf32>
    %6 = arith.mulf %4, %5 : vector<1x4x1xf32>
    %7 = vector.broadcast %6 : vector<1x4x1xf32> to vector<2x4x256xf32>
    %8 = arith.subf %0, %7 : vector<2x4x256xf32>
    %9 = arith.mulf %8, %8 : vector<2x4x256xf32>
    %cst_4 = arith.constant dense<0.000000e+00> : vector<2x4xf32>
    %10 = vector.multi_reduction <add>, %9, %cst_4 [2] : vector<2x4x256xf32> to vector<2x4xf32>
    %11 = vector.shape_cast %10 : vector<2x4xf32> to vector<2x4x1xf32>
    %cst_5 = arith.constant dense<0.000000e+00> : vector<4x1xf32>
    %12 = vector.multi_reduction <add>, %11, %cst_5 [0] : vector<2x4x1xf32> to vector<4x1xf32>
    %13 = vector.shape_cast %12 : vector<4x1xf32> to vector<1x4x1xf32>
    %cst_6 = arith.constant 0.001953125 : f32
    %14 = vector.broadcast %cst_6 : f32 to vector<1x4x1xf32>
    %15 = arith.mulf %13, %14 : vector<1x4x1xf32>
    %cst_7 = arith.constant 9.99999974E-6 : f32
    %16 = vector.broadcast %cst_7 : f32 to vector<1x4x1xf32>
    %17 = arith.addf %15, %16 : vector<1x4x1xf32>
    %18 = math.rsqrt %17 : vector<1x4x1xf32>
    %c0_8 = arith.constant 0 : index
    %c0_9 = arith.constant 0 : index
    %c0_10 = arith.constant 0 : index
    %19 = vector.load %arg1[%c0_8, %c0_9, %c0_10] : memref<1x4x1xf32, #tpu.memory_space<vmem>>, vector<1x4x1xf32>
    %20 = arith.mulf %19, %18 : vector<1x4x1xf32>
    %21 = vector.broadcast %20 : vector<1x4x1xf32> to vector<2x4x256xf32>
    %22 = arith.mulf %8, %21 : vector<2x4x256xf32>
    %c0_11 = arith.constant 0 : index
    %c0_12 = arith.constant 0 : index
    %c0_13 = arith.constant 0 : index
    %23 = vector.load %arg2[%c0_11, %c0_12, %c0_13] : memref<1x4x1xf32, #tpu.memory_space<vmem>>, vector<1x4x1xf32>
    %24 = vector.broadcast %23 : vector<1x4x1xf32> to vector<2x4x256xf32>
    %25 = arith.addf %22, %24 : vector<2x4x256xf32>
    %c0_14 = arith.constant 0 : index
    %c0_15 = arith.constant 0 : index
    %c0_16 = arith.constant 0 : index
    %26 = vector.load %arg3[%c0_14, %c0_15, %c0_16] : memref<2x4x256xf32, #tpu.memory_space<vmem>>, vector<2x4x256xf32>
    tpu.vector_store %arg3[%c0_14, %c0_15, %c0_16], %25 {strides = array<i32>} : memref<2x4x256xf32, #tpu.memory_space<vmem>>, vector<2x4x256xf32>,
    %c0_17 = arith.constant 0 : index
    %c0_18 = arith.constant 0 : index
    %c0_19 = arith.constant 0 : index
    %27 = vector.load %arg4[%c0_17, %c0_18, %c0_19] : memref<1x4x1xf32, #tpu.memory_space<vmem>>, vector<1x4x1xf32>
    tpu.vector_store %arg4[%c0_17, %c0_18, %c0_19], %6 {strides = array<i32>} : memref<1x4x1xf32, #tpu.memory_space<vmem>>, vector<1x4x1xf32>,
    %c0_20 = arith.constant 0 : index
    %c0_21 = arith.constant 0 : index
    %c0_22 = arith.constant 0 : index
    %28 = vector.load %arg5[%c0_20, %c0_21, %c0_22] : memref<1x4x1xf32, #tpu.memory_space<vmem>>, vector<1x4x1xf32>
    tpu.vector_store %arg5[%c0_20, %c0_21, %c0_22], %15 {strides = array<i32>} : memref<1x4x1xf32, #tpu.memory_space<vmem>>, vector<1x4x1xf32>,
    return
  }
}

</mosaic_0001>

<bundles_post_ra>
// kernel: tpu_custom_call.1
= control target key start
LH: loop header
LB: loop body
LE: loop exit
PB: predicated region body
PF: predicated region fallthrough
CT: control target
= control target key end

     0   :  { %11 = vsyncpa [#allocation3], 0  ;;  %s303_s0 = inlined_call_operand.hbm [shape: f32[2,4,256], index: 0, kind: input, shape index: {}]   ;;  %s304_s1 = inlined_call_operand.vmem [shape: f32[1,4,1], index: 1, kind: input, shape index: {}]   ;;  %s305_s2 = inlined_call_operand.vmem [shape: f32[1,4,1], index: 2, kind: input, shape index: {}]   ;;  %s306_s3 = inlined_call_operand.hbm [shape: f32[2,4,256], index: 3, kind: output, shape index: {0}]   ;;  %s307_s4 = inlined_call_operand.vmem [shape: f32[1,4,1], index: 4, kind: output, shape index: {1}]   ;;  %s308_s5 = inlined_call_operand.vmem [shape: f32[1,4,1], index: 5, kind: output, shape index: {2}]  }
   0x1   :  { %12 = vsyncpa [#allocation4], 0  ;;  %s211_s18 = smov [#allocation2]   ;;  %s163_s22 = scalar_lea.hbm %s303_s0, 256 }
   0x2   :  { %s18_s19 = sshll.u32 %s211_s18, 4  ;;  %p164_p0 = scmp.ne.s32.totalorder %s303_s0, %s163_s22  ;;  %s19_s19 = int_to_ptr.vmem [resolvable:$true] %s18_s19 }
   0x3   :  { %p167_p1 = scmp.lt.u32.totalorder %s163_s22, %s303_s0 }
   0x5   :  { %p169_p2 = pnand %p167_p1, %p164_p0 }
   0x7   :  { %172 = shalt.err (!%p169_p2)
}
   0x8   :  { %s173_s27 = scalar_lea.vmem %s19_s19, 256  ;;  %p178_p4 = scmp.lt.s32.totalorder %s19_s19, %s19_s19 }
   0x9   :  { %p174_p3 = scmp.ne.s32.totalorder %s19_s19, %s173_s27  ;;  %p179_p5 = scmp.lt.s32.totalorder %s173_s27, %s173_s27 }
   0xb   :  { %p180_p6 = por %p179_p5, %p178_p4 }
   0xd   :  { %p181_p7 = pnand %p180_p6, %p174_p3 }
   0xf   :  { %184 = shalt.err (!%p181_p7)
}
  0x10   :  { %s212_s28 = smov 128   ;;  %s213_s29 = smov 8  }
  0x11   :  { %24 = dma.hbm_to_vmem [thread:$0]  %s303_s0, 256, %s19_s19, [#allocation3], %s212_s28, %s212_s28, %s213_s29  }
  0x12   :  { %207 = dma.done.wait [#allocation3], 256  }
  0x13   :  { %208 = vsyncadd [#allocation3], 4294967040  ;;  %vm40_vm0 = vcmask 1043456   ;;  %v32_v0 = vld [vmem:[#allocation2] sm:$0xff]  ;;  %v33_v1 = vld [vmem:[#allocation2 + $0x8] sm:$0xff]  ;;  %v59_v12 = vlaneseq  ;;  %vm123_vm1 = vcmask 3072  }
  0x14   :  { %v36_v2 = vcombine.high %v32_v0, %v32_v0  ;;  %v41_v3 = vsel %vm40_vm0, %v32_v0, 0.0  ;;  %v37_v4 = vcombine.high %v33_v1, %v33_v1  ;;  %v46_v6 = vsel %vm40_vm0, %v33_v1, 0.0  ;;  %v106_v36 = vld [vmem:[%s305_s2] sm:$0xf]  ;;  %s216_s2 = smov [#allocation5]  }
  0x15   :  { %v214_v10 = vmov 839922192   ;;  %v60_v15 = vshrl.u32 %v59_v12, 7  ;;  %v215_v35 = vmov 0   ;;  %v90_v44 = vld [vmem:[%s304_s1] sm:$0xf] }
  0x16   :  { %v42_v5 = vsel %vm40_vm0, %v36_v2, 0.0  ;;  %v47_v7 = vsel %vm40_vm0, %v37_v4, 0.0  ;;  %v57_v11 = vunpack.c.l.s4 %v214_v10  ;;  %157 = vset.pattern.permute.xlu0 %v215_v35  ;;  %158 = vset.pattern.permute.xlu1 %v215_v35  ;;  %s131_s13 = sshll.u32 %s216_s2, 4  ;;  %s132_s13 = int_to_ptr.vmem [resolvable:$true] %s131_s13 }
  0x17   :  { %v43_v8 = vadd.f32 %v42_v5, %v41_v3  ;;  %v48_v9 = vadd.f32 %v47_v7, %v46_v6  ;;  %p190_p9 = scmp.lt.s32.totalorder %s132_s13, %s132_s13 }
  0x18   :  { %v58_v14 = vunpack.c.0.s8 %v57_v11 }
  0x19   :  { %44 = vadd.xlane.f32.xlu0 %v43_v8 }
  0x1a   :  { %v61_v19 = vsub.s32 %v58_v14, %v60_v15 }
  0x1d   :  { %49 = vadd.xlane.f32.xlu0 %v48_v9 }
  0xa6   :  { %v45_v13 = vpop.xlane.xlu0 %44 }
  0xa7   :  { %v51_v17 = vsel %vm40_vm0, %v45_v13, 0.0 }
  0xaa   :  { %v50_v16 = vpop.xlane.xlu0 %49 }
  0xab   :  { %v52_v18 = vsel %vm40_vm0, %v50_v16, 0.0 }
  0xac   :  { %v53_v20 = vadd.f32 %v52_v18, %v51_v17 }
  0xae   :  { %v54_v21 = vmul.f32 0.001953125, %v53_v20 }
  0xb0   :  { %v62_v22 = vrot.slane %v54_v21, %v61_v19  ;;  %124 = vst.msk [vmem:[%s307_s4] sm:$0xf] %vm123_vm1, %v54_v21 }
  0xb2   :  { %v65_v23 = vsub.f32 %v33_v1, %v62_v22  ;;  %v64_v24 = vsub.f32 %v32_v0, %v62_v22 }
  0xb4   :  { %v66_v25 = vmul.f32 %v64_v24, %v64_v24  ;;  %v67_v26 = vmul.f32 %v65_v23, %v65_v23 }
  0xb6   :  { %v70_v27 = vcombine.high %v66_v25, %v66_v25  ;;  %v71_v28 = vcombine.high %v67_v26, %v67_v26  ;;  %v74_v29 = vsel %vm40_vm0, %v66_v25, 0.0  ;;  %v79_v33 = vsel %vm40_vm0, %v67_v26, 0.0 }
  0xb8   :  { %v75_v30 = vsel %vm40_vm0, %v70_v27, 0.0  ;;  %v80_v32 = vsel %vm40_vm0, %v71_v28, 0.0 }
  0xb9   :  { %v76_v31 = vadd.f32 %v75_v30, %v74_v29  ;;  %v81_v34 = vadd.f32 %v80_v32, %v79_v33 }
  0xbb   :  { %77 = vadd.xlane.f32.xlu1 %v76_v31 }
  0xbf   :  { %82 = vadd.xlane.f32.xlu1 %v81_v34 }
  0xd0   :  { %109 = vperm.xlu1 %158, %v106_v36  }
 0x148   :  { %v78_v37 = vpop.xlane.xlu1 %77 }
 0x149   :  { %v84_v39 = vsel %vm40_vm0, %v78_v37, 0.0 }
 0x14c   :  { %v83_v38 = vpop.xlane.xlu1 %82 }
 0x14d   :  { %v85_v40 = vsel %vm40_vm0, %v83_v38, 0.0 }
 0x14e   :  { %v86_v41 = vadd.f32 %v85_v40, %v84_v39 }
 0x150   :  { %v87_v42 = vmul.f32 0.001953125, %v86_v41  ;;  %v110_v47 = vpop.permute.xlu1 %109 }
 0x151   :  { %v117_v50 = vrot.slane %v110_v47, %v61_v19 }
 0x152   :  { %v88_v43 = vadd.f32 1e-05, %v87_v42  ;;  %125 = vst.msk [vmem:[%s308_s5] sm:$0xf] %vm123_vm1, %v87_v42  ;;  %s185_s5 = scalar_lea.vmem %s132_s13, 256 }
 0x153   :  { %p186_p8 = scmp.ne.s32.totalorder %s132_s13, %s185_s5  ;;  %p191_p10 = scmp.lt.s32.totalorder %s185_s5, %s185_s5 }
 0x154   :  { %161 = vrsqrt.f32 %v88_v43 }
 0x155   :  { %p192_p11 = por %p191_p10, %p190_p9 }
 0x157   :  { %p193_p12 = pnand %p192_p11, %p186_p8 }
 0x15e   :  { %v162_v45 = vpop.eup %161 }
 0x15f   :  { %v91_v46 = vmul.f32 %v162_v45, %v90_v44 }
 0x161   :  { %94 = vperm.xlu0 %157, %v91_v46  }
 0x1e0   :  { %v95_v48 = vpop.permute.xlu0 %94 }
 0x1e1   :  { %v102_v49 = vrot.slane %v95_v48, %v61_v19 }
 0x1e3   :  { %v104_v51 = vmul.f32 %v102_v49, %v64_v24  ;;  %v105_v52 = vmul.f32 %v102_v49, %v65_v23 }
 0x1e5   :  { %v119_v53 = vadd.f32 %v117_v50, %v104_v51  ;;  %v120_v54 = vadd.f32 %v117_v50, %v105_v52 }
 0x1e7   :  { %121 = vst [vmem:[#allocation5] sm:$0xff] %v119_v53  ;;  %122 = vst [vmem:[#allocation5 + $0x8] sm:$0xff] %v120_v54 }
 0x1e8   :  { %196 = shalt.err (!%p193_p12)
}
 0x1e9   :  { %s197_s15 = scalar_lea.hbm %s306_s3, 256 }
 0x1ea   :  { %p198_p13 = scmp.ne.s32.totalorder %s306_s3, %s197_s15  ;;  %p201_p0 = scmp.lt.u32.totalorder %s197_s15, %s306_s3 }
 0x1ec   :  { %p203_p1 = pnand %p201_p0, %p198_p13 }
 0x1ee   :  { %206 = shalt.err (!%p203_p1)
}
 0x1ef   :  { %137 = dma.vmem_to_hbm [thread:$0]  %s132_s13, 256, %s306_s3, [#allocation4], %s212_s28, %s212_s28, %s213_s29  }
 0x1f0   :  { %209 = dma.done.wait [#allocation4], 256  }
 0x1f1   :  { %210 = vsyncadd [#allocation4], 4294967040 }
 0x1f2   :  { %149 = vsyncpa [#allocation3], 1 }
 0x1f3   :  { %150 = vsyncpa [#allocation4], 1 }

</bundles_post_ra>
